<compile_context>
chip_gen: v5e
topology: v5e:2x2
jax: 0.10.0
libtpu: 0.0.40
codegen_flags: <defaults>
</compile_context>

<pallas_src>
import functools

import jax
import jax.numpy as jnp
from jax.experimental import pallas as pl
from jax.experimental.pallas import tpu as pltpu


def _round_up(a, b):
    return ((a + b - 1) // b) * b


def _cdiv(a, b):
    return -(-a // b)


def _classify_kernel(x_ref, w_ref, b_ref, o_ref, acc_ref, *, hw, hw_chunk, needs_mask):
    # x_ref: (tn, C1, hw_chunk) native dtype   w_ref: (C1, C2) f32 (1/HW folded in)
    # b_ref: (1, C2) f32                        o_ref: (tn, C2)  acc_ref: (tn, C1) f32
    j = pl.program_id(1)

    @pl.when(j == 0)
    def _():
        acc_ref[...] = jnp.zeros_like(acc_ref)

    x = x_ref[...].astype(jnp.float32)  # upcast in-kernel; accumulate in f32
    if needs_mask:
        # Last HW chunk may run past H*W: zero out the out-of-range lanes.
        lane = jax.lax.broadcasted_iota(jnp.int32, x.shape, 2)
        x = jnp.where(j * hw_chunk + lane < hw, x, 0.0)
    acc_ref[...] += jnp.sum(x, axis=-1)

    @pl.when(j == pl.num_programs(1) - 1)
    def _():
        # acc holds sum over H*W; 1/(H*W) is folded into w, so this is the mean @ w.
        y = jnp.dot(acc_ref[...], w_ref[...], preferred_element_type=jnp.float32)
        o_ref[...] = (y + b_ref[...]).astype(o_ref.dtype)


def _pick_tiles(N, C1, C2, HW, itemsize, tn_target):
    """Choose (batch_tile, hw_chunk, vmem_limit_bytes) for the current TPU generation."""
    try:  # physical VMEM per TensorCore: 64 MiB (v7x) / 128 MiB (v5e, v6e)
        vmem_phys = int(pltpu.get_tpu_info().vmem_capacity_bytes)
    except Exception:
        vmem_phys = 64 * 1024 * 1024  # conservative fallback (v7x)
    vmem_limit = min((vmem_phys * 3) // 4, 100 * 1024 * 1024)
    budget = (vmem_limit * 3) // 4  # headroom for compiler temporaries

    # Batch tile: multiple of 8 sublanes; keep >=2 "parallel" batch steps when the
    # batch allows it so both v7x TensorCores get work.
    tn = max(8, min((tn_target // 8) * 8, _round_up(N, 8)))
    if N >= 16 and _cdiv(N, tn) < 2:
        tn = max(8, _round_up(_cdiv(N, 2), 8))

    resident = C1 * C2 * 4 + C2 * 4  # whole weight + bias resident in VMEM (f32)

    def input_budget(tn_):
        # budget minus resident weights, double-buffered output and the accumulator
        return budget - resident - 2 * tn_ * C2 * 4 - tn_ * C1 * 4

    if 2 * tn * C1 * HW * itemsize <= input_budget(tn):
        return tn, HW, vmem_limit

    # Chunk the H*W reduction axis (lane dim: multiple of 128) so the batch tile can
    # stay large for any feature-map size.
    def max_chunk(tn_):
        per_lane = 2 * tn_ * C1 * itemsize  # double-buffered input bytes per lane
        return (input_budget(tn_) // max(per_lane, 1) // 128) * 128

    hw_chunk = max_chunk(tn)
    while hw_chunk < 128 and tn > 8:
        tn = max(8, ((tn // 2) // 8) * 8)
        hw_chunk = max_chunk(tn)
    hw_chunk = max(128, hw_chunk)
    if hw_chunk >= HW:
        hw_chunk = HW
    return tn, hw_chunk, vmem_limit


def _fused_gap_conv1x1(x_nchw, w_c1c2, b_c2, *, tn_target=256):
    """Global average pool over HxW fused with a 1x1 conv (+bias): (N,C1,H,W) -> (N,C2)."""
    N, C1, H, W = x_nchw.shape
    C2 = w_c1c2.shape[1]
    HW = H * W

    # Contiguous (free) reshape; KEEP the native dtype — the upcast happens in-kernel.
    x3 = x_nchw.reshape(N, C1, HW)
    itemsize = jnp.dtype(x3.dtype).itemsize

    tn, hw_chunk, vmem_limit = _pick_tiles(N, C1, C2, HW, itemsize, tn_target)
    n_batch = _cdiv(N, tn)
    n_hw = _cdiv(HW, hw_chunk)
    needs_mask = (n_hw > 1) and (HW % hw_chunk != 0)

    # Fold the 1/(H*W) mean scale into the (tiny) weight: sum @ (w/HW) == mean @ w.
    w = w_c1c2.astype(jnp.float32) * (1.0 / float(HW))
    b2 = b_c2.reshape(1, C2).astype(jnp.float32)

    x_spec_kw = {}
    if n_hw > 1 and tn * C1 * hw_chunk * itemsize < (2 << 20):
        # Small per-step blocks: deepen buffering to hide DMA issue latency.
        x_spec_kw["pipeline_mode"] = pl.Buffered(3)

    kern = functools.partial(
        _classify_kernel, hw=HW, hw_chunk=hw_chunk, needs_mask=needs_mask
    )
    out = pl.pallas_call(
        kern,
        out_shape=jax.ShapeDtypeStruct((N, C2), x_nchw.dtype),
        grid=(n_batch, n_hw),
        in_specs=[
            pl.BlockSpec((tn, C1, hw_chunk), lambda i, j: (i, 0, j), **x_spec_kw),
            pl.BlockSpec(memory_space=pltpu.MemorySpace.VMEM),  # whole weight resident
            pl.BlockSpec(memory_space=pltpu.MemorySpace.VMEM),  # whole bias resident
        ],
        out_specs=pl.BlockSpec((tn, C2), lambda i, j: (i, 0)),
        scratch_shapes=[pltpu.VMEM((tn, C1), jnp.float32)],
        compiler_params=pltpu.CompilerParams(
            dimension_semantics=("parallel", "arbitrary"),
            vmem_limit_bytes=int(vmem_limit),
        ),
    )(x3, w, b2)
    return out


def classify_forward(x, w_c1c2, b_c2, *, tn_target=256):
    """Classify.forward. `x` may be a single (N, C1, H, W) array or a list of arrays
    (their pooled features are channel-concatenated, as in PyTorch); the concat is
    folded into the conv by slicing the weight rows. Output is (N, C2) (flattened)."""
    xs = x if isinstance(x, (list, tuple)) else [x]
    out = None
    c_off = 0
    for xi in xs:
        c1_i = xi.shape[1]
        bias_i = b_c2 if out is None else jnp.zeros_like(b_c2)
        y = _fused_gap_conv1x1(
            xi, w_c1c2[c_off:c_off + c1_i], bias_i, tn_target=tn_target
        )
        out = y if out is None else out + y
        c_off += c1_i
    return out  # already flattened: (N, C2)


def make_classify_params(key, c1, c2):
    """Deterministic synthetic Conv2d(c1, c2, 1) params.

    Returns (w: (c1, c2), b: (c2,)) — transposed from PyTorch's (c2, c1, 1, 1)."""
    k_w, k_b = jax.random.split(key, 2)
    bound = 1.0 / (c1 ** 0.5)
    w = jax.random.uniform(k_w, (c2, c1), jnp.float32, -bound, bound)
    b = jax.random.uniform(k_b, (c2,), jnp.float32, -bound, bound)
    return w.T, b


if __name__ == "__main__":
    c1, c2 = 4, 8
    key = jax.random.PRNGKey(0)
    k_x, k_x2, k_p = jax.random.split(key, 3)

    w, b = make_classify_params(k_p, c1, c2)

    # 1) f32 input, batch=2, 16x16 feature map.
    x = jax.random.normal(k_x, (2, c1, 16, 16), dtype=jnp.float32)
    out = jax.block_until_ready(classify_forward(x, w, b))
    assert out.shape == (2, c2) and out.dtype == jnp.float32
    ref = jnp.mean(x, axis=(2, 3)) @ w + b
    assert jnp.allclose(out, ref, atol=1e-5, rtol=1e-5), float(
        jnp.max(jnp.abs(out - ref))
    )

    # 2) Native-bf16 input with a ragged batch (N=3) and non-128 H*W (no pad, no
    #    wrapper upcast; f32 accumulation in-kernel).
    x2 = jax.random.normal(k_x2, (3, c1, 10, 10), dtype=jnp.bfloat16)
    out2 = jax.block_until_ready(classify_forward(x2, w, b))
    assert out2.shape == (3, c2) and out2.dtype == jnp.bfloat16
    ref2 = jnp.mean(x2.astype(jnp.float32), axis=(2, 3)) @ w + b
    assert jnp.allclose(out2.astype(jnp.float32), ref2, atol=5e-2, rtol=5e-2)

    # 3) List input: pooled features are channel-concatenated before the conv.
    out3 = jax.block_until_ready(classify_forward([x[:, :2], x[:, 2:]], w, b))
    assert jnp.allclose(out3, ref, atol=1e-5, rtol=1e-5)

    print("KERNEL_OK")
</pallas_src>

<mosaic_0001>
module attributes {stable_mosaic.version = 11 : i64} {
  func.func @_classify_kernel(%arg0: i32, %arg1: i32, %arg2: memref<8x4x256xf32, #tpu.memory_space<vmem>>, %arg3: memref<4x8xf32, #tpu.memory_space<vmem>>, %arg4: memref<1x8xf32, #tpu.memory_space<vmem>>, %arg5: memref<8x8xf32, #tpu.memory_space<vmem>>, %arg6: memref<8x4xf32, #tpu.memory_space<vmem>>) attributes {dimension_semantics = [#tpu.dimension_semantics<parallel>, #tpu.dimension_semantics<arbitrary>], iteration_bounds = array<i64: 1, 1>, scalar_prefetch = 0 : i64, scratch_operands = 1 : i64, tpu.core_type = #tpu.core_type<tc>, window_params = [{transform_indices = @transform_0, window_bounds = array<i64: 8, 4, 256>}, {pipeline_mode = #tpu.pipeline_mode<synchronous>, transform_indices = @transform_1, window_bounds = array<i64: 4, 8>}, {pipeline_mode = #tpu.pipeline_mode<synchronous>, transform_indices = @transform_2, window_bounds = array<i64: 1, 8>}, {transform_indices = @transform_3, window_bounds = array<i64: 8, 8>}]} {
    %c0_i32 = arith.constant 0 : i32
    %0 = arith.cmpi eq, %arg1, %c0_i32 : i32
    %1 = arith.extui %0 : i1 to i32
    %c0_i32_0 = arith.constant 0 : i32
    %2 = arith.cmpi ne, %1, %c0_i32_0 : i32
    scf.if %2 {
      %cst_9 = arith.constant 0.000000e+00 : f32
      %11 = vector.broadcast %cst_9 : f32 to vector<8x4xf32>
      %c0_10 = arith.constant 0 : index
      %c0_11 = arith.constant 0 : index
      %12 = vector.load %arg6[%c0_10, %c0_11] : memref<8x4xf32, #tpu.memory_space<vmem>>, vector<8x4xf32>
      tpu.vector_store %arg6[%c0_10, %c0_11], %11 {strides = array<i32>} : memref<8x4xf32, #tpu.memory_space<vmem>>, vector<8x4xf32>,
    } else {
    }
    %c0 = arith.constant 0 : index
    %c0_1 = arith.constant 0 : index
    %c0_2 = arith.constant 0 : index
    %3 = vector.load %arg2[%c0, %c0_1, %c0_2] : memref<8x4x256xf32, #tpu.memory_space<vmem>>, vector<8x4x256xf32>
    %c0_3 = arith.constant 0 : index
    %c0_4 = arith.constant 0 : index
    %4 = vector.load %arg6[%c0_3, %c0_4] : memref<8x4xf32, #tpu.memory_space<vmem>>, vector<8x4xf32>
    %cst = arith.constant dense<0.000000e+00> : vector<8x4xf32>
    %5 = vector.multi_reduction <add>, %3, %cst [2] : vector<8x4x256xf32> to vector<8x4xf32>
    %6 = arith.addf %4, %5 : vector<8x4xf32>
    %c0_5 = arith.constant 0 : index
    %c0_6 = arith.constant 0 : index
    %7 = vector.load %arg6[%c0_5, %c0_6] : memref<8x4xf32, #tpu.memory_space<vmem>>, vector<8x4xf32>
    tpu.vector_store %arg6[%c0_5, %c0_6], %6 {strides = array<i32>} : memref<8x4xf32, #tpu.memory_space<vmem>>, vector<8x4xf32>,
    %c0_i32_7 = arith.constant 0 : i32
    %8 = arith.cmpi eq, %arg1, %c0_i32_7 : i32
    %9 = arith.extui %8 : i1 to i32
    %c0_i32_8 = arith.constant 0 : i32
    %10 = arith.cmpi ne, %9, %c0_i32_8 : i32
    scf.if %10 {
      %c0_9 = arith.constant 0 : index
      %c0_10 = arith.constant 0 : index
      %11 = vector.load %arg6[%c0_9, %c0_10] : memref<8x4xf32, #tpu.memory_space<vmem>>, vector<8x4xf32>
      %c0_11 = arith.constant 0 : index
      %c0_12 = arith.constant 0 : index
      %12 = vector.load %arg3[%c0_11, %c0_12] : memref<4x8xf32, #tpu.memory_space<vmem>>, vector<4x8xf32>
      %cst_13 = arith.constant dense<0.000000e+00> : vector<8x8xf32>
      %13 = tpu.matmul %11, %12, %cst_13 {dimension_numbers = #tpu.dot_dimension_numbers<[1], [0], [0], [1], [0, 0, 1, 1], [], []>} : vector<8x4xf32>, vector<4x8xf32>, vector<8x8xf32> -> vector<8x8xf32>
      %c0_14 = arith.constant 0 : index
      %c0_15 = arith.constant 0 : index
      %14 = vector.load %arg4[%c0_14, %c0_15] : memref<1x8xf32, #tpu.memory_space<vmem>>, vector<1x8xf32>
      %15 = vector.broadcast %14 : vector<1x8xf32> to vector<8x8xf32>
      %16 = arith.addf %13, %15 : vector<8x8xf32>
      %c0_16 = arith.constant 0 : index
      %c0_17 = arith.constant 0 : index
      %17 = vector.load %arg5[%c0_16, %c0_17] : memref<8x8xf32, #tpu.memory_space<vmem>>, vector<8x8xf32>
      tpu.vector_store %arg5[%c0_16, %c0_17], %16 {strides = array<i32>} : memref<8x8xf32, #tpu.memory_space<vmem>>, vector<8x8xf32>,
    } else {
    }
    return
  }
  func.func @transform_0(%arg0: i32, %arg1: i32) -> (i32, i32, i32) {
    %c0_i32 = arith.constant 0 : i32
    %c0_i32_0 = arith.constant 0 : i32
    return %arg0, %c0_i32, %arg1 : i32, i32, i32
  }
  func.func @transform_1(%arg0: i32, %arg1: i32) -> (i32, i32) {
    %c0_i32 = arith.constant 0 : i32
    %c0_i32_0 = arith.constant 0 : i32
    %c0_i32_1 = arith.constant 0 : i32
    return %c0_i32, %c0_i32_0 : i32, i32
  }
  func.func @transform_2(%arg0: i32, %arg1: i32) -> (i32, i32) {
    %c0_i32 = arith.constant 0 : i32
    %c0_i32_0 = arith.constant 0 : i32
    %c0_i32_1 = arith.constant 0 : i32
    return %c0_i32, %c0_i32_0 : i32, i32
  }
  func.func @transform_3(%arg0: i32, %arg1: i32) -> (i32, i32) {
    %c0_i32 = arith.constant 0 : i32
    %c0_i32_0 = arith.constant 0 : i32
    return %arg0, %c0_i32 : i32, i32
  }
}

</mosaic_0001>

<bundles_post_ra>
// kernel: tpu_custom_call.1
= control target key start
LH: loop header
LB: loop body
LE: loop exit
PB: predicated region body
PF: predicated region fallthrough
CT: control target
= control target key end

     0   :  { %8 = vsyncpa [#allocation4], 0  ;;  %s394_s0 = inlined_call_operand.hbm [shape: f32[2,4,256], index: 0, kind: input, shape index: {}]   ;;  %s395_s1 = inlined_call_operand.hbm [shape: f32[4,8], index: 1, kind: input, shape index: {}]   ;;  %s396_s2 = inlined_call_operand.vmem [shape: f32[1,8], index: 2, kind: input, shape index: {}]   ;;  %s397_s3 = inlined_call_operand.hbm [shape: f32[2,8], index: 3, kind: output, shape index: {}]  }
   0x1   :  { %9 = vsyncpa [#allocation7], 0 }
   0x2   :  { %10 = vsyncpa [#allocation5], 0 }
   0x3   :  { %14 = vsyncadd [#allocation4], 768  ;;  %s15_s14 = sshll.u32 %s394_s0, 4  ;;  %s334_s15 = smov [#allocation3]   ;;  %s16_s14 = int_to_ptr.hbm [resolvable:$true] %s15_s14 }
   0x4   :  { %s17_s16 = sshll.u32 %s334_s15, 4  ;;  %s29_s19 = sshll.u32 %s395_s1, 4  ;;  %s18_s16 = int_to_ptr.vmem [resolvable:$true] %s17_s16  ;;  %s30_s19 = int_to_ptr.hbm [resolvable:$true] %s29_s19 }
   0x5   :  { %s335_s20 = smov 128   ;;  %s336_s21 = smov 8  }
   0x6   :  { %23 = dma.hbm_to_vmem [thread:$0]  %s16_s14, 256, %s18_s16, [#allocation4], %s335_s20, %s335_s20, %s336_s21  }
   0x7   :  { %s337_s22 = smov [#allocation6]  }
   0x8   :  { %s31_s23 = sshll.u32 %s337_s22, 4  ;;  %s32_s23 = int_to_ptr.vmem [resolvable:$true] %s31_s23 }
   0x9   :  { %34 = dma.hbm_to_vmem [thread:$0]  %s30_s19, 64, %s32_s23, [#allocation7]  }
   0xa   :  { %328 = dma.done.wait [#allocation4], 1024  }
   0xb   :  { %329 = vsyncadd [#allocation4], 4294966272 }
   0xc   :  { %330 = dma.done.wait [#allocation7], 64  }
   0xd   :  { %331 = vsyncadd [#allocation7], 4294967232  ;;  %v51_v0 = vld [vmem:[#allocation3] sm:$0xff]  ;;  %v53_v1 = vld [vmem:[#allocation3 + $0x10] sm:$0xff]  ;;  %vm111_vm0 = vcmask 1043456   ;;  %vm49_vm1 = vcmask 31744   ;;  %v160_v51 = vlaneseq }
   0xe   :  { %68 = vst [vmem:[#allocation1] ss:$2 sm:$0xff] %v51_v0  ;;  %v52_v2 = vld [vmem:[#allocation3 + $0x8] sm:$0xff]  ;;  %v54_v3 = vld [vmem:[#allocation3 + $0x18] sm:$0xff]  ;;  %v55_v4 = vld [vmem:[#allocation3 + $0x20] sm:$0xff]  ;;  %v338_v48 = vmov 0.0  }
   0xf   :  { %76 = vst [vmem:[#allocation1 + $0x20] ss:$2 sm:$0xff] %v53_v1  ;;  %v57_v5 = vld [vmem:[#allocation3 + $0x30] sm:$0xff]  ;;  %v56_v10 = vld [vmem:[#allocation3 + $0x28] sm:$0xff]  ;;  %v58_v16 = vld [vmem:[#allocation3 + $0x38] sm:$0xff]  ;;  %v161_v53 = vand.u32 127, %v160_v51 }
  0x10   :  { %72 = vst [vmem:[#allocation1 + $0x10] ss:$2 sm:$0xff] %v52_v2  ;;  %v192_v49 = vld [vmem:[#allocation6] sm:$0xf]  ;;  %vm170_vm2 = vcmask 1041409   ;;  %vm172_vm3 = vcmask 1042434  }
  0x11   :  { %80 = vst [vmem:[#allocation1 + $0x30] ss:$2 sm:$0xff] %v54_v3  ;;  %245 = vmatpush.msk.msra.mxu0 %vm111_vm0, %v192_v49  ;;  %vm174_vm4 = vcmask 1043459   ;;  %vm176_vm5 = vcmask 1044484   ;;  %vm178_vm6 = vcmask 1045509   ;;  %vm180_vm7 = vcmask 1046534  }
  0x12   :  { %50 = vst.msk [vmem:[#allocation2] sm:$0xff] %vm49_vm1, %v338_v48  ;;  %vm182_vm8 = vcmask 1047559   ;;  %vm223_vm9 = vcmask 64512  }
  0x15   :  { %v69_v6 = vld.sshfl [vmem:[#allocation1] sm:$0xff pattern:$0x75316420]  ;;  %v70_v7 = vld.sshfl [vmem:[#allocation1 + $0x8] sm:$0xff pattern:$0x75316420] }
  0x16   :  { %v112_v8 = vsel %vm111_vm0, %v69_v6, 0.0  ;;  %v113_v9 = vsel %vm111_vm0, %v70_v7, 0.0  ;;  %83 = vst [vmem:[#allocation1] ss:$2 sm:$0xff] %v55_v4 }
  0x17   :  { %v114_v11 = vadd.f32 %v113_v9, %v112_v8  ;;  %v77_v12 = vld.sshfl [vmem:[#allocation1 + $0x20] sm:$0xff pattern:$0x75316420]  ;;  %v78_v13 = vld.sshfl [vmem:[#allocation1 + $0x28] sm:$0xff pattern:$0x75316420] }
  0x18   :  { %v122_v14 = vsel %vm111_vm0, %v77_v12, 0.0  ;;  %v123_v15 = vsel %vm111_vm0, %v78_v13, 0.0  ;;  %89 = vst [vmem:[#allocation1 + $0x20] ss:$2 sm:$0xff] %v57_v5 }
  0x19   :  { %115 = vadd.xlane.f32.xlu0 %v114_v11  ;;  %v124_v17 = vadd.f32 %v123_v15, %v122_v14  ;;  %v73_v18 = vld.sshfl [vmem:[#allocation1 + $0x10] sm:$0xff pattern:$0x75316420]  ;;  %v74_v19 = vld.sshfl [vmem:[#allocation1 + $0x18] sm:$0xff pattern:$0x75316420] }
  0x1a   :  { %86 = vst [vmem:[#allocation1 + $0x10] ss:$2 sm:$0xff] %v56_v10  ;;  %v117_v20 = vsel %vm111_vm0, %v73_v18, 0.0  ;;  %v118_v21 = vsel %vm111_vm0, %v74_v19, 0.0  ;;  %v59_v9 = vld [vmem:[#allocation2] sm:$0xff] }
  0x1b   :  { %125 = vadd.xlane.f32.xlu1 %v124_v17  ;;  %v81_v22 = vld.sshfl [vmem:[#allocation1 + $0x30] sm:$0xff pattern:$0x75316420]  ;;  %v82_v23 = vld.sshfl [vmem:[#allocation1 + $0x38] sm:$0xff pattern:$0x75316420]  ;;  %v119_v26 = vadd.f32 %v118_v21, %v117_v20 }
  0x1c   :  { %92 = vst [vmem:[#allocation1 + $0x30] ss:$2 sm:$0xff] %v58_v16  ;;  %v127_v24 = vsel %vm111_vm0, %v81_v22, 0.0  ;;  %v128_v25 = vsel %vm111_vm0, %v82_v23, 0.0  ;;  %v255_v14 = vld [vmem:[%s396_s2] ss:$0 sm:$0xff] }
  0x1d   :  { %v84_v27 = vld.sshfl [vmem:[#allocation1] sm:$0xff pattern:$0x75316420]  ;;  %v85_v28 = vld.sshfl [vmem:[#allocation1 + $0x8] sm:$0xff pattern:$0x75316420]  ;;  %v129_v32 = vadd.f32 %v128_v25, %v127_v24 }
  0x1e   :  { %v132_v29 = vsel %vm111_vm0, %v84_v27, 0.0  ;;  %v133_v30 = vsel %vm111_vm0, %v85_v28, 0.0 }
  0x1f   :  { %v134_v31 = vadd.f32 %v133_v30, %v132_v29  ;;  %v90_v33 = vld.sshfl [vmem:[#allocation1 + $0x20] sm:$0xff pattern:$0x75316420]  ;;  %v91_v34 = vld.sshfl [vmem:[#allocation1 + $0x28] sm:$0xff pattern:$0x75316420] }
  0x20   :  { %v142_v39 = vsel %vm111_vm0, %v90_v33, 0.0  ;;  %v143_v40 = vsel %vm111_vm0, %v91_v34, 0.0 }
  0x21   :  { %120 = vadd.xlane.f32.xlu0 %v119_v26  ;;  %135 = vadd.xlane.f32.xlu2 %v134_v31  ;;  %v87_v35 = vld.sshfl [vmem:[#allocation1 + $0x10] sm:$0xff pattern:$0x75316420]  ;;  %v88_v36 = vld.sshfl [vmem:[#allocation1 + $0x18] sm:$0xff pattern:$0x75316420]  ;;  %v144_v46 = vadd.f32 %v143_v40, %v142_v39 }
  0x22   :  { %v137_v37 = vsel %vm111_vm0, %v87_v35, 0.0  ;;  %v138_v38 = vsel %vm111_vm0, %v88_v36, 0.0 }
  0x23   :  { %130 = vadd.xlane.f32.xlu1 %v129_v32  ;;  %v93_v41 = vld.sshfl [vmem:[#allocation1 + $0x30] sm:$0xff pattern:$0x75316420]  ;;  %v94_v42 = vld.sshfl [vmem:[#allocation1 + $0x38] sm:$0xff pattern:$0x75316420]  ;;  %v139_v45 = vadd.f32 %v138_v38, %v137_v37 }
  0x24   :  { %v147_v43 = vsel %vm111_vm0, %v93_v41, 0.0  ;;  %v148_v44 = vsel %vm111_vm0, %v94_v42, 0.0 }
  0x25   :  { %v149_v47 = vadd.f32 %v148_v44, %v147_v43 }
  0x29   :  { %140 = vadd.xlane.f32.xlu2 %v139_v45  ;;  %145 = vadd.xlane.f32.xlu0 %v144_v46 }
  0x2b   :  { %150 = vadd.xlane.f32.xlu1 %v149_v47 }
  0x8c   :  { %v116_v50 = vpop.xlane.xlu0 %115 }
  0x8d   :  { %v162_v56 = vperm.slane %v116_v50, %v161_v53 }
  0x8e   :  { %v126_v52 = vpop.xlane.xlu1 %125 }
  0x8f   :  { %v164_v58 = vperm.slane %v126_v52, %v161_v53 }
  0x94   :  { %v121_v54 = vpop.xlane.xlu0 %120  ;;  %v136_v55 = vpop.xlane.xlu2 %135 }
  0x95   :  { %v163_v57 = vperm.slane %v121_v54, %v161_v53  ;;  %v166_v0 = vperm.slane %v136_v55, %v161_v53 }
  0x96   :  { %v131_v59 = vpop.xlane.xlu1 %130 }
  0x97   :  { %v171_v60 = vsel %vm170_vm2, %v163_v57, %v162_v56  ;;  %v165_v61 = vperm.slane %v131_v59, %v161_v53 }
  0x98   :  { %v173_v62 = vsel %vm172_vm3, %v164_v58, %v171_v60 }
  0x99   :  { %v175_v63 = vsel %vm174_vm4, %v165_v61, %v173_v62 }
  0x9a   :  { %v177_v5 = vsel %vm176_vm5, %v166_v0, %v175_v63 }
  0x9c   :  { %v141_v1 = vpop.xlane.xlu2 %140  ;;  %v146_v2 = vpop.xlane.xlu0 %145 }
  0x9d   :  { %v167_v3 = vperm.slane %v141_v1, %v161_v53  ;;  %v168_v4 = vperm.slane %v146_v2, %v161_v53 }
  0x9e   :  { %v151_v6 = vpop.xlane.xlu1 %150 }
  0x9f   :  { %v179_v7 = vsel %vm178_vm6, %v167_v3, %v177_v5  ;;  %v169_v8 = vperm.slane %v151_v6, %v161_v53 }
  0xa0   :  { %v181_v10 = vsel %vm180_vm7, %v168_v4, %v179_v7 }
  0xa1   :  { %v183_v11 = vsel %vm182_vm8, %v169_v8, %v181_v10 }
  0xa2   :  { %v185_v12 = vadd.f32 %v183_v11, %v59_v9 }
  0xa4   :  { %187 = vst.msk [vmem:[#allocation2] sm:$0xff] %vm49_vm1, %v185_v12 }
  0xab   :  { %v191_v13 = vld [vmem:[#allocation2] sm:$0xff] }
  0xac   :  { %246 = vmatmul.msk.f32.vlgmr.msra.gmra.mxu0 %vm49_vm1, %v191_v13 }
 0x129   :  { %v220_v15 = vpop.f32.mrf.mxu0 }
 0x12a   :  { %v221_v16 = vadd.f32 %v255_v14, %v220_v15 }
 0x12c   :  { %224 = vst.msk [vmem:[#allocation8] sm:$0xff] %vm223_vm9, %v221_v16 }
 0x12d   :  { %228 = vsyncadd [#allocation5], 96  ;;  %s231_s26 = sshll.u32 %s397_s3, 4  ;;  %s339_s27 = smov [#allocation8]   ;;  %s232_s26 = int_to_ptr.hbm [resolvable:$true] %s231_s26 }
 0x12e   :  { %s229_s28 = sshll.u32 %s339_s27, 4  ;;  %s340_s29 = smov 32   ;;  %s230_s28 = int_to_ptr.vmem [resolvable:$true] %s229_s28 }
 0x12f   :  { %s341_s30 = smov 2  }
 0x130   :  { %237 = dma.vmem_to_hbm [thread:$0]  %s230_s28, 32, %s232_s26, [#allocation5], %s340_s29, %s340_s29, %s341_s30  }
 0x131   :  { %332 = dma.done.wait [#allocation5], 128  }
 0x132   :  { %333 = vsyncadd [#allocation5], 4294967168 }
 0x133   :  { %242 = vsyncpa [#allocation4], 1 }
 0x134   :  { %243 = vsyncpa [#allocation7], 1 }
 0x135   :  { %244 = vsyncpa [#allocation5], 1 }

</bundles_post_ra>
